<compile_context>
chip_gen: v6e
topology: v6e:2x2x1
jax: 0.10.0
libtpu: 0.0.40
codegen_flags: <defaults>
</compile_context>

<pallas_src>
import functools

import jax
import jax.numpy as jnp
from jax.experimental import pallas as pl
from jax.experimental.pallas import tpu as pltpu

TEMPERATURE = 0.07
EPS = 1e-12          # matches torch.nn.functional.normalize default eps
_NEG_BIG = -1e30     # finite "-inf" for masked logits (exp underflows to 0)


def _round_up(x, m):
    return ((x + m - 1) // m) * m


def _l2_normalize(x):
    # x / max(||x||, eps)  ==  x * rsqrt(max(||x||^2, eps^2))
    sq = jnp.sum(x * x, axis=1, keepdims=True)
    return x * jax.lax.rsqrt(jnp.maximum(sq, jnp.float32(EPS * EPS)))


def _nce_partial_kernel(qs_ref, negs_ref, m_ref, s_ref, *,
                        n_valid, tiles_per_core, tn, has_padding):
    """One negatives tile: logits = qs @ negsT block, online logsumexp update.

    qs_ref:   (B_pad, D_pad)  compute_dtype, resident (normalized q / temp)
    negs_ref: (D_pad, TN)     compute_dtype, streamed (normalized negatives^T)
    m_ref:    (B_pad, 1)      f32 output block  -- per-core running max
    s_ref:    (B_pad, 1)      f32 output block  -- per-core running sum(exp(.-m))
    """
    c = pl.program_id(0)        # core / parallel axis
    i = pl.program_id(1)        # negatives-tile / reduction axis

    @pl.when(i == 0)
    def _init():
        m_ref[...] = jnp.zeros_like(m_ref)   # m starts at 0 (logits <= 1/temp, safe)
        s_ref[...] = jnp.zeros_like(s_ref)

    # Lane-dense logits on the MXU: (B_pad, D) x (D, TN) -> (B_pad, TN),
    # canonical M x K . K x N, no operand transpose, f32 accumulation.
    sim = jax.lax.dot_general(qs_ref[...], negs_ref[...],
                              (((1,), (0,)), ((), ())),
                              preferred_element_type=jnp.float32)

    def update(logits):
        m_prev = m_ref[...]                                        # (B_pad, 1)
        m_new = jnp.maximum(m_prev, jnp.max(logits, axis=-1, keepdims=True))
        alpha = jnp.exp(m_prev - m_new)
        p = jnp.exp(logits - m_new)                                # (B_pad, TN)
        s_ref[...] = alpha * s_ref[...] + jnp.sum(p, axis=-1, keepdims=True)
        m_ref[...] = m_new

    if not has_padding:
        update(sim)
    else:
        gtile = c * tiles_per_core + i
        needs_mask = (gtile + 1) * tn > n_valid

        @pl.when(needs_mask)
        def _masked_tile():
            col = gtile * tn + jax.lax.broadcasted_iota(jnp.int32, sim.shape, 1)
            update(jnp.where(col < n_valid, sim, jnp.float32(_NEG_BIG)))

        @pl.when(jnp.logical_not(needs_mask))
        def _full_tile():
            update(sim)


def nce_loss(query, target, negatives, *,
             compute_dtype=jnp.bfloat16,
             n_cores=2,
             max_tile_cols=4096,
             tile_bytes=8 * 1024 * 1024):
    """query/target: (B,C,H,W), negatives: (N,C,H,W) -> scalar f32 loss."""
    B = query.shape[0]
    N = negatives.shape[0]
    q2 = query.reshape(B, -1).astype(jnp.float32)
    t2 = target.reshape(B, -1).astype(jnp.float32)
    n2 = negatives.reshape(N, -1).astype(jnp.float32)
    D = q2.shape[1]

    B_pad = _round_up(B, 8)
    D_pad = _round_up(D, 128)
    itemsize = jnp.dtype(compute_dtype).itemsize

    # Negatives tile: TN lane columns (multiple of 128) so one (D_pad, TN)
    # block is ~tile_bytes (double-buffered by BlockSpec).
    cols_fit = max(128, (tile_bytes // max(D_pad * itemsize, 1)) // 128 * 128)
    TN = int(min(cols_fit, max_tile_cols,
                 max(128, _round_up(int(pl.cdiv(N, n_cores)), 128))))
    tiles_per_core = int(pl.cdiv(N, n_cores * TN))
    N_pad = n_cores * tiles_per_core * TN

    # ---- tiny (B x D) prep stays in the wrapper (plain XLA) -----------------
    q_n = _l2_normalize(q2)
    t_n = _l2_normalize(t2)
    sim_pos = jnp.sum(q_n * t_n, axis=1) / jnp.float32(TEMPERATURE)     # (B,) f32
    qs = (q_n / jnp.float32(TEMPERATURE)).astype(compute_dtype)
    qs_p = jnp.zeros((B_pad, D_pad), compute_dtype).at[:B, :D].set(qs)

    # ---- negatives: normalize + transpose to lane-dense (D, N) + pad + cast --
    n_n = _l2_normalize(n2)
    nT_p = jnp.zeros((D_pad, N_pad), compute_dtype).at[:D, :N].set(
        n_n.T.astype(compute_dtype))

    kernel = functools.partial(_nce_partial_kernel,
                               n_valid=N, tiles_per_core=tiles_per_core,
                               tn=TN, has_padding=(N_pad != N))

    grid_spec = pltpu.PrefetchScalarGridSpec(
        num_scalar_prefetch=0,
        grid=(n_cores, tiles_per_core),
        in_specs=[
            # normalized query / temperature: resident across the whole grid
            pl.BlockSpec((B_pad, D_pad), lambda c, i: (0, 0)),
            # normalized-transposed negatives: streamed, half per core
            pl.BlockSpec((D_pad, TN), lambda c, i: (0, c * tiles_per_core + i)),
        ],
        out_specs=[
            pl.BlockSpec((B_pad, 1), lambda c, i: (c, 0)),   # per-core running max
            pl.BlockSpec((B_pad, 1), lambda c, i: (c, 0)),   # per-core running sumexp
        ],
    )

    tile_vmem = D_pad * TN * itemsize
    qs_vmem = B_pad * D_pad * itemsize
    vmem_limit = int(min(64 * 1024 * 1024,
                         max(32 * 1024 * 1024,
                             2 * tile_vmem + 2 * qs_vmem + (4 << 20))))

    cost = pl.CostEstimate(
        flops=2 * B_pad * D_pad * N_pad,
        transcendentals=B_pad * N_pad + 4 * n_cores * B_pad,
        bytes_accessed=N_pad * D_pad * itemsize + B_pad * D_pad * itemsize
                       + 2 * n_cores * B_pad * 4,
    )

    m_part, s_part = pl.pallas_call(
        kernel,
        out_shape=(jax.ShapeDtypeStruct((n_cores * B_pad, 1), jnp.float32),
                   jax.ShapeDtypeStruct((n_cores * B_pad, 1), jnp.float32)),
        grid_spec=grid_spec,
        compiler_params=pltpu.CompilerParams(
            dimension_semantics=("parallel", "arbitrary"),
            vmem_limit_bytes=vmem_limit,
        ),
        cost_estimate=cost,
    )(qs_p, nT_p)

    # ---- combine per-core partial (m, sum_exp) with the positive logit (f32) --
    m_part = m_part.reshape(n_cores, B_pad)[:, :B]   # (n_cores, B)
    s_part = s_part.reshape(n_cores, B_pad)[:, :B]   # (n_cores, B)
    m_all = jnp.maximum(sim_pos, jnp.max(m_part, axis=0))
    total = jnp.exp(sim_pos - m_all) + jnp.sum(jnp.exp(m_part - m_all) * s_part,
                                               axis=0)
    lse = m_all + jnp.log(total)
    return jnp.mean(lse - sim_pos)


def _reference_nce_loss(query, target, negatives):
    # Pure-JAX f32 reference mirroring the PyTorch module.
    def l2norm(x):
        return x / jnp.maximum(jnp.linalg.norm(x, axis=1, keepdims=True), EPS)

    q = l2norm(query.reshape(query.shape[0], -1).astype(jnp.float32))
    t = l2norm(target.reshape(target.shape[0], -1).astype(jnp.float32))
    n = l2norm(negatives.reshape(negatives.shape[0], -1).astype(jnp.float32))
    sim_pos = jnp.sum(q * t, axis=1, keepdims=True)
    sim_neg = q @ n.T
    logits = jnp.concatenate([sim_pos, sim_neg], axis=1) / TEMPERATURE
    lse = jax.scipy.special.logsumexp(logits, axis=1)
    return jnp.mean(lse - logits[:, 0])


if __name__ == "__main__":
    key = jax.random.PRNGKey(0)
    k1, k2, k3 = jax.random.split(key, 3)

    B, C, H, W = 2, 4, 16, 16   # query / target batch
    N = 8                       # number of negatives

    query = jax.random.normal(k1, (B, C, H, W), dtype=jnp.float32)
    target = jax.random.normal(k2, (B, C, H, W), dtype=jnp.float32)
    negatives = jax.random.normal(k3, (N, C, H, W), dtype=jnp.float32)

    loss = jax.block_until_ready(nce_loss(query, target, negatives))

    ref = _reference_nce_loss(query, target, negatives)
    # bf16 MXU operands (f32 accumulation, f32 softmax math) -> ~1e-3 error.
    assert jnp.allclose(loss, ref, rtol=5e-2, atol=5e-2), (loss, ref)

    print("KERNEL_OK")
</pallas_src>

<mosaic_0001>
module attributes {stable_mosaic.version = 11 : i64} {
  func.func @_nce_partial_kernel(%arg0: i32, %arg1: i32, %arg2: memref<8x1024xbf16, #tpu.memory_space<vmem>>, %arg3: memref<1024x128xbf16, #tpu.memory_space<vmem>>, %arg4: memref<8x1xf32, #tpu.memory_space<vmem>>, %arg5: memref<8x1xf32, #tpu.memory_space<vmem>>) attributes {dimension_semantics = [#tpu.dimension_semantics<parallel>, #tpu.dimension_semantics<arbitrary>], iteration_bounds = array<i64: 2, 1>, scalar_prefetch = 0 : i64, scratch_operands = 0 : i64, tpu.core_type = #tpu.core_type<tc>, window_params = [{pipeline_mode = #tpu.pipeline_mode<synchronous>, transform_indices = @transform_0, window_bounds = array<i64: 8, 1024>}, {transform_indices = @transform_1, window_bounds = array<i64: 1024, 128>}, {transform_indices = @transform_2, window_bounds = array<i64: 8, 1>}, {transform_indices = @transform_3, window_bounds = array<i64: 8, 1>}]} {
    %c0_i32 = arith.constant 0 : i32
    %0 = arith.cmpi eq, %arg1, %c0_i32 : i32
    %1 = arith.extui %0 : i1 to i32
    %c0_i32_0 = arith.constant 0 : i32
    %2 = arith.cmpi ne, %1, %c0_i32_0 : i32
    scf.if %2 {
      %cst_7 = arith.constant 0.000000e+00 : f32
      %16 = vector.broadcast %cst_7 : f32 to vector<8x1xf32>
      %c0_8 = arith.constant 0 : index
      %c0_9 = arith.constant 0 : index
      %17 = vector.load %arg4[%c0_8, %c0_9] : memref<8x1xf32, #tpu.memory_space<vmem>>, vector<8x1xf32>
      tpu.vector_store %arg4[%c0_8, %c0_9], %16 {strides = array<i32>} : memref<8x1xf32, #tpu.memory_space<vmem>>, vector<8x1xf32>,
      %cst_10 = arith.constant 0.000000e+00 : f32
      %18 = vector.broadcast %cst_10 : f32 to vector<8x1xf32>
      %c0_11 = arith.constant 0 : index
      %c0_12 = arith.constant 0 : index
      %19 = vector.load %arg5[%c0_11, %c0_12] : memref<8x1xf32, #tpu.memory_space<vmem>>, vector<8x1xf32>
      tpu.vector_store %arg5[%c0_11, %c0_12], %18 {strides = array<i32>} : memref<8x1xf32, #tpu.memory_space<vmem>>, vector<8x1xf32>,
    } else {
    }
    %c0 = arith.constant 0 : index
    %c0_1 = arith.constant 0 : index
    %3 = vector.load %arg2[%c0, %c0_1] : memref<8x1024xbf16, #tpu.memory_space<vmem>>, vector<8x1024xbf16>
    %c0_2 = arith.constant 0 : index
    %c0_3 = arith.constant 0 : index
    %4 = vector.load %arg3[%c0_2, %c0_3] : memref<1024x128xbf16, #tpu.memory_space<vmem>>, vector<1024x128xbf16>
    %cst = arith.constant dense<0.000000e+00> : vector<8x128xf32>
    %5 = tpu.matmul %3, %4, %cst {dimension_numbers = #tpu.dot_dimension_numbers<[1], [0], [0], [1], [0, 0, 1, 1], [], []>} : vector<8x1024xbf16>, vector<1024x128xbf16>, vector<8x128xf32> -> vector<8x128xf32>
    %c1_i32 = arith.constant 1 : i32
    %6 = arith.muli %arg0, %c1_i32 : i32
    %7 = arith.addi %6, %arg1 : i32
    %c1_i32_4 = arith.constant 1 : i32
    %8 = arith.addi %7, %c1_i32_4 : i32
    %c128_i32 = arith.constant 128 : i32
    %9 = arith.muli %8, %c128_i32 : i32
    %c8_i32 = arith.constant 8 : i32
    %10 = arith.cmpi sgt, %9, %c8_i32 : i32
    %11 = arith.extui %10 : i1 to i32
    %c0_i32_5 = arith.constant 0 : i32
    %12 = arith.cmpi ne, %11, %c0_i32_5 : i32
    scf.if %12 {
      %c128_i32_7 = arith.constant 128 : i32
      %16 = arith.muli %7, %c128_i32_7 : i32
      %17 = tpu.iota {dimensions = array<i32: 1>} : vector<8x128xi32>
      %18 = vector.broadcast %16 : i32 to vector<8x128xi32>
      %19 = arith.addi %18, %17 : vector<8x128xi32>
      %c8_i32_8 = arith.constant 8 : i32
      %20 = vector.broadcast %c8_i32_8 : i32 to vector<8x128xi32>
      %21 = arith.cmpi slt, %19, %20 : vector<8x128xi32>
      %cst_9 = arith.constant -1.000000e+30 : f32
      %22 = vector.broadcast %cst_9 : f32 to vector<8x128xf32>
      %23 = arith.select %21, %5, %22 : vector<8x128xi1>, vector<8x128xf32>
      %c0_10 = arith.constant 0 : index
      %c0_11 = arith.constant 0 : index
      %24 = vector.load %arg4[%c0_10, %c0_11] : memref<8x1xf32, #tpu.memory_space<vmem>>, vector<8x1xf32>
      %cst_12 = arith.constant dense<0xFF800000> : vector<8xf32>
      %25 = vector.multi_reduction <maximumf>, %23, %cst_12 [1] : vector<8x128xf32> to vector<8xf32>
      %26 = vector.shape_cast %25 : vector<8xf32> to vector<8x1xf32>
      %27 = arith.maximumf %24, %26 : vector<8x1xf32>
      %28 = arith.subf %24, %27 : vector<8x1xf32>
      %29 = math.exp %28 : vector<8x1xf32>
      %30 = vector.broadcast %27 : vector<8x1xf32> to vector<8x128xf32>
      %31 = arith.subf %23, %30 : vector<8x128xf32>
      %32 = math.exp %31 : vector<8x128xf32>
      %c0_13 = arith.constant 0 : index
      %c0_14 = arith.constant 0 : index
      %33 = vector.load %arg5[%c0_13, %c0_14] : memref<8x1xf32, #tpu.memory_space<vmem>>, vector<8x1xf32>
      %34 = arith.mulf %29, %33 : vector<8x1xf32>
      %cst_15 = arith.constant dense<0.000000e+00> : vector<8xf32>
      %35 = vector.multi_reduction <add>, %32, %cst_15 [1] : vector<8x128xf32> to vector<8xf32>
      %36 = vector.shape_cast %35 : vector<8xf32> to vector<8x1xf32>
      %37 = arith.addf %34, %36 : vector<8x1xf32>
      %c0_16 = arith.constant 0 : index
      %c0_17 = arith.constant 0 : index
      %38 = vector.load %arg5[%c0_16, %c0_17] : memref<8x1xf32, #tpu.memory_space<vmem>>, vector<8x1xf32>
      tpu.vector_store %arg5[%c0_16, %c0_17], %37 {strides = array<i32>} : memref<8x1xf32, #tpu.memory_space<vmem>>, vector<8x1xf32>,
      %c0_18 = arith.constant 0 : index
      %c0_19 = arith.constant 0 : index
      %39 = vector.load %arg4[%c0_18, %c0_19] : memref<8x1xf32, #tpu.memory_space<vmem>>, vector<8x1xf32>
      tpu.vector_store %arg4[%c0_18, %c0_19], %27 {strides = array<i32>} : memref<8x1xf32, #tpu.memory_space<vmem>>, vector<8x1xf32>,
    } else {
    }
    %true = arith.constant true
    %13 = arith.xori %10, %true : i1
    %14 = arith.extui %13 : i1 to i32
    %c0_i32_6 = arith.constant 0 : i32
    %15 = arith.cmpi ne, %14, %c0_i32_6 : i32
    scf.if %15 {
      %c0_7 = arith.constant 0 : index
      %c0_8 = arith.constant 0 : index
      %16 = vector.load %arg4[%c0_7, %c0_8] : memref<8x1xf32, #tpu.memory_space<vmem>>, vector<8x1xf32>
      %cst_9 = arith.constant dense<0xFF800000> : vector<8xf32>
      %17 = vector.multi_reduction <maximumf>, %5, %cst_9 [1] : vector<8x128xf32> to vector<8xf32>
      %18 = vector.shape_cast %17 : vector<8xf32> to vector<8x1xf32>
      %19 = arith.maximumf %16, %18 : vector<8x1xf32>
      %20 = arith.subf %16, %19 : vector<8x1xf32>
      %21 = math.exp %20 : vector<8x1xf32>
      %22 = vector.broadcast %19 : vector<8x1xf32> to vector<8x128xf32>
      %23 = arith.subf %5, %22 : vector<8x128xf32>
      %24 = math.exp %23 : vector<8x128xf32>
      %c0_10 = arith.constant 0 : index
      %c0_11 = arith.constant 0 : index
      %25 = vector.load %arg5[%c0_10, %c0_11] : memref<8x1xf32, #tpu.memory_space<vmem>>, vector<8x1xf32>
      %26 = arith.mulf %21, %25 : vector<8x1xf32>
      %cst_12 = arith.constant dense<0.000000e+00> : vector<8xf32>
      %27 = vector.multi_reduction <add>, %24, %cst_12 [1] : vector<8x128xf32> to vector<8xf32>
      %28 = vector.shape_cast %27 : vector<8xf32> to vector<8x1xf32>
      %29 = arith.addf %26, %28 : vector<8x1xf32>
      %c0_13 = arith.constant 0 : index
      %c0_14 = arith.constant 0 : index
      %30 = vector.load %arg5[%c0_13, %c0_14] : memref<8x1xf32, #tpu.memory_space<vmem>>, vector<8x1xf32>
      tpu.vector_store %arg5[%c0_13, %c0_14], %29 {strides = array<i32>} : memref<8x1xf32, #tpu.memory_space<vmem>>, vector<8x1xf32>,
      %c0_15 = arith.constant 0 : index
      %c0_16 = arith.constant 0 : index
      %31 = vector.load %arg4[%c0_15, %c0_16] : memref<8x1xf32, #tpu.memory_space<vmem>>, vector<8x1xf32>
      tpu.vector_store %arg4[%c0_15, %c0_16], %19 {strides = array<i32>} : memref<8x1xf32, #tpu.memory_space<vmem>>, vector<8x1xf32>,
    } else {
    }
    return
  }
  func.func @transform_0(%arg0: i32, %arg1: i32) -> (i32, i32) {
    %c0_i32 = arith.constant 0 : i32
    %c0_i32_0 = arith.constant 0 : i32
    %c0_i32_1 = arith.constant 0 : i32
    return %c0_i32, %c0_i32_0 : i32, i32
  }
  func.func @transform_1(%arg0: i32, %arg1: i32) -> (i32, i32) {
    %c1_i32 = arith.constant 1 : i32
    %0 = arith.muli %arg0, %c1_i32 : i32
    %1 = arith.addi %0, %arg1 : i32
    %c0_i32 = arith.constant 0 : i32
    %c0_i32_0 = arith.constant 0 : i32
    return %c0_i32, %1 : i32, i32
  }
  func.func @transform_2(%arg0: i32, %arg1: i32) -> (i32, i32) {
    %c0_i32 = arith.constant 0 : i32
    %c0_i32_0 = arith.constant 0 : i32
    return %arg0, %c0_i32 : i32, i32
  }
  func.func @transform_3(%arg0: i32, %arg1: i32) -> (i32, i32) {
    %c0_i32 = arith.constant 0 : i32
    %c0_i32_0 = arith.constant 0 : i32
    return %arg0, %c0_i32 : i32, i32
  }
}

</mosaic_0001>

<bundles_post_ra>
// kernel: tpu_custom_call.1
= control target key start
LH: loop header
LB: loop body
LE: loop exit
PB: predicated region body
PF: predicated region fallthrough
CT: control target
= control target key end

     0   :  { %9 = vsyncpa [#allocation3], 0  ;;  %s1802_s0 = inlined_call_operand.hbm [shape: bf16[8,1024], index: 0, kind: input, shape index: {}]   ;;  %s1803_s1 = inlined_call_operand.hbm [shape: bf16[1024,256], index: 1, kind: input, shape index: {}]   ;;  %s1804_s2 = inlined_call_operand.vmem [shape: f32[16,1], index: 2, kind: output, shape index: {0}]   ;;  %s1805_s3 = inlined_call_operand.vmem [shape: f32[16,1], index: 3, kind: output, shape index: {1}]  }
   0x1   :  { %10 = vsyncpa [#allocation5], 0 }
   0x2   :  { %12 = vsyncpa [#allocation5 + $0x1], 0  ;;  %s1593_s12 = smov 0   ;;  %s1595_s13 = smov 0  }
   0x3   :  { %s1597_s14 = smov 0   ;;  %s1599_s15 = smov 0  }
   0x4   :  { %s1601_s16 = smov 0   ;;  %s1603_s17 = smov 0  }
   0x5 LB: > { %s1121_s18 = sadd.s32 4294967295, %s1563_s17   ;;  %s60_s19 = sadd.s32 1, %s1551_s14  ;;  %s1563_s17 = sphi %s1603_s17, %s18_s17   ;;  %s1559_s16 = sphi %s1601_s16, %s1819_s16   ;;  %s1555_s15 = sphi %s1599_s15, %s1818_s15   ;;  %s1551_s14 = sphi %s1597_s14, %s1817_s14   ;;  %s1547_s13 = sphi %s1595_s13, %s1816_s13   ;;  %s1543_s12 = sphi %s1593_s12, %s1815_s12  }
   0x6   : > { %p67_p0 = scmp.ne.s32.totalorder %s1551_s14, %s1547_s13  ;;  %p68_p1 = scmp.eq.s32.totalorder %s1563_s17, 0 }
   0x7   : > { %p73_p2 = scmp.ne.s32.totalorder %s1547_s13, %s1543_s12  ;;  %p1627_p3 = scmp.eq.s32.totalorder %s1121_s18, 0 }
   0x8   : > { %p69_p4 = por %p68_p1, %p67_p0  ;;  %p1123_p5 = scmp.ge.s32.totalorder %s1563_s17, 1 }
   0x9   : > { %p1634_p6 = por %p1627_p3, %p73_p2  ;;  %p136_p7 = scmp.lt.s32.totalorder %s1563_s17, 3 }
   0xa   : > { %s1565_s23 = smov [#allocation2]   ;;  %p1316_p10 = scmp.lt.s32.totalorder %s1563_s17, 2 }
   0xb   : > { %s1809_s21 = scalar_select %p1634_p6, 1, 0 }
   0xc   : > { %p1639_p8 = pnand %p1123_p5, %p136_p7  ;;  %s149_s24 = sshll.u32 %s1565_s23, 4  ;;  %s150_s24 = int_to_ptr.vmem [resolvable:$true] %s149_s24 }
   0xd   : > { %s160_s25 = sand.u32 1, %s1551_s14   ;;  %p1649_p12 = pnand %p1316_p10, %p69_p4 }
   0xe   : > { %s1810_s22 = scalar_select %p1639_p8, 1, 0 }
   0xf   : > { %p1307_p9 = pneg %p1639_p8  ;;  %s1466_s27 = scalar_lea.vmem %s150_s24, 512 }
  0x10   : > { %p1467_p0 = scmp.ne.s32.totalorder %s150_s24, %s1466_s27  ;;  %p1474_p5 = scmp.lt.s32.totalorder %s150_s24, %s150_s24 }
  0x11   : > { %p1308_p11 = pnand %p1307_p9, %p1627_p3  ;;  %p1475_p7 = scmp.lt.s32.totalorder %s1466_s27, %s1466_s27 }
  0x13   : > { %p1457_p13 = pneg %p1308_p11  ;;  %p1476_p6 = por %p1475_p7, %p1474_p5 }
  0x15   : > { %p1469_p1 = pnand %p1467_p0, %p1457_p13 }
  0x17   : > { %p1470_p2 = pneg %p1469_p1 }
  0x19   : > { %p1477_p8 = pnand %p1476_p6, %p1470_p2 }
  0x1b   : > { %1480 = shalt.err (!%p1477_p8)
}
  0x1c   : > { %1310 = dma.hbm_to_vmem [thread:$0]  (!%p1308_p11), %s1802_s0, 512, %s150_s24, [#allocation3]  }
  0x1d   : > { %s30_s30 = sadd.s32 1, %s1559_s16  ;;  %s1126_s4 = sshll.u32 %s160_s25, 9 }
  0x1e   : > { %p32_p4 = scmp.ge.s32.totalorder %s30_s30, 2  ;;  %s1127_s5 = sshll.u32 %s1559_s16, 6 }
  0x1f   : > { %s164_s6 = scalar_lea.vmem [#allocation4], %s1126_s4  ;;  %s170_s10 = scalar_lea.hbm %s1803_s1, %s1127_s5 }
  0x20   : > { %s171_s7 = sshll.u32 %s164_s6, 4  ;;  %s1821_s30 = smov (%p32_p4, %s30_s30), 0  ;;  %s172_s7 = int_to_ptr.vmem [resolvable:$true] %s171_s7 }
  0x21   : > { %s57_s11 = ssub.s32 %s1559_s16, %s1821_s30  ;;  %s161_s18 = scalar_lea.sflag [#allocation5], %s160_s25 }
  0x22   : > { %p58_p6 = scmp.eq.s32.totalorder %s57_s11, 0  ;;  %p1483_p8 = pneg %p1649_p12 }
  0x23   : > { %s1494_s23 = scalar_lea.vmem %s172_s7, 8192  ;;  %s1566_s24 = smov [#allocation4]  }
  0x24   : > { %s1668_s12 = scalar_select %p58_p6, %s1551_s14, %s60_s19  }
  0x25   : > { %p1495_p9 = scmp.ne.s32.totalorder %s172_s7, %s1494_s23  ;;  %s1499_s27 = sshll.u32 %s1566_s24, 4  ;;  %s1500_s27 = int_to_ptr.vmem [resolvable:$false] %s1499_s27 }
  0x26   : > { %s1501_s28 = scalar_lea.vmem %s1500_s27, 16384  ;;  %p1502_p13 = scmp.lt.s32.totalorder %s172_s7, %s1500_s27 }
  0x27   : > { %p1497_p10 = pnand %p1495_p9, %p1483_p8  ;;  %p1503_p0 = scmp.lt.s32.totalorder %s1501_s28, %s1494_s23 }
  0x29   : > { %p1498_p11 = pneg %p1497_p10  ;;  %p1504_p1 = por %p1503_p0, %p1502_p13 }
  0x2b   : > { %p1505_p2 = pnand %p1504_p1, %p1498_p11 }
  0x2d   : > { %1508 = shalt.err (!%p1505_p2)
}
  0x2e   : > { %s1567_s29 = smov 128   ;;  %s1568_s19 = smov 64  }
  0x2f   : > { %s1569_s4 = smov 4   ;;  %p1812_p5 = scmp.ne.s32.totalorder %s1810_s22, 0 }
  0x30   : > { %1314 = dma.hbm_to_vmem [thread:$0]  (!%p1649_p12), %s170_s10, 8192, %s172_s7, %s161_s18, %s1567_s29, %s1568_s19, %s1569_s4  }
  0x31   : > { %183 = sbr.rel (%p1812_p5) target bundleno = 1186 (0x4a2), region = 28 }
  0x36   : > { %1534 = dma.done.wait (%p1627_p3), [#allocation3], 512  }
  0x37   : > { %1536 = vsyncadd (%p1627_p3), [#allocation3], 4294966784  ;;  %s189_s25 = sand.u32 1, %s1547_s13   ;;  %p1813_p7 = scmp.ne.s32.totalorder %s1809_s21, 0 }
  0x38   : > { %s1130_s5 = sshll.u32 %s189_s25, 9  ;;  %s190_s6 = scalar_lea.sflag [#allocation5], %s189_s25 }
  0x39   : > { %s1681_s8 = scalar_lea.vmem [#allocation4], %s1130_s5 }
  0x3a   : > { %1538 = dma.done.wait (%p1813_p7), %s190_s6, 8192  }
  0x3b   : > { %1540 = vsyncadd (%p1813_p7), %s190_s6, 4294959104  ;;  %p220_p12 = scmp.lt.s32.totalorder %s1555_s15, 1  ;;  %vm233_vm0 = vcmask 7168   ;;  %v1570_v0 = vmov 0.0   ;;  %v1373_v1 = vld [vmem:[%s1681_s8 + $0x78] sm:$0xff]   ;;  %v1377_v5 = vld [vmem:[%s1681_s8 + $0x70] sm:$0xff]  }
  0x3c   : > { %v1374_v2 = vld [vmem:[%s1681_s8 + $0xf8] sm:$0xff]   ;;  %1213 = vmatprep.subr.bf16.mxu0 %v1373_v1  ;;  %v1378_v6 = vld [vmem:[%s1681_s8 + $0xf0] sm:$0xff]   ;;  %v1381_v9 = vld [vmem:[%s1681_s8 + $0x68] sm:$0xff]   ;;  %s1211_s18 = sshll.u32 %s1555_s15, 7 }
  0x3d   : > { %s221_s20 = scalar_select %p220_p12, %s1555_s15, 1  ;;  %v1375_v3 = vld [vmem:[%s1681_s8 + $0x38] sm:$0xff]   ;;  %1235 = vmatprep.subr.bf16.mxu1 %v1374_v2  ;;  %v1379_v7 = vld [vmem:[%s1681_s8 + $0x30] sm:$0xff]   ;;  %v1382_v10 = vld [vmem:[%s1681_s8 + $0xe8] sm:$0xff]  }
  0x3e   : > { %v1376_v4 = vld [vmem:[%s1681_s8 + $0xb8] sm:$0xff]   ;;  %1214 = vmatpush3.bf16.msra.mxu0 %v1375_v3  ;;  %v1380_v8 = vld [vmem:[%s1681_s8 + $0xb0] sm:$0xff]   ;;  %v1383_v11 = vld [vmem:[%s1681_s8 + $0x28] sm:$0xff]   ;;  %s1768_s23 = sadd.s32 128, %s1211_s18 }
  0x3f   : > { %s1131_s22 = sshll.u32 %s221_s20, 3  ;;  %1236 = vmatpush3.bf16.msra.mxu1 %v1376_v4  ;;  %1215 = vmatprep.subr.bf16.mxu0 %v1377_v5  ;;  %v1384_v12 = vld [vmem:[%s1681_s8 + $0xa8] sm:$0xff]   ;;  %v1385_v13 = vld [vmem:[%s1681_s8 + $0x60] sm:$0xff]   ;;  %v1389_v17 = vld [vmem:[%s1681_s8 + $0x58] sm:$0xff]   ;;  %p1206_p3 = scmp.le.s32.totalorder %s1768_s23, 8 }
  0x40   : > { %s1692_s9 = scalar_lea.vmem %s1804_s2, %s1131_s22  ;;  %s1697_s11 = scalar_lea.vmem %s1805_s3, %s1131_s22  ;;  %1237 = vmatprep.subr.bf16.mxu1 %v1378_v6  ;;  %v1386_v14 = vld [vmem:[%s1681_s8 + $0xe0] sm:$0xff]   ;;  %v1390_v18 = vld [vmem:[%s1681_s8 + $0xd8] sm:$0xff]   ;;  %v1393_v21 = vld [vmem:[%s1681_s8 + $0x50] sm:$0xff]  }
  0x41   : > { %234 = vst.msk [vmem:[%s1692_s9] sm:$0xff] %vm233_vm0, %v1570_v0  ;;  %235 = vst.msk [vmem:[%s1697_s11] sm:$0xff] %vm233_vm0, %v1570_v0  ;;  %v1387_v15 = vld [vmem:[%s1681_s8 + $0x20] sm:$0xff]   ;;  %v1391_v19 = vld [vmem:[%s1681_s8 + $0x18] sm:$0xff]  }
  0x42   : > { %1216 = vmatpush3.bf16.msra.mxu0 %v1379_v7  ;;  %v1388_v16 = vld [vmem:[%s1681_s8 + $0xa0] sm:$0xff]   ;;  %v1392_v20 = vld [vmem:[%s1681_s8 + $0x98] sm:$0xff]   ;;  %v1394_v22 = vld [vmem:[%s1681_s8 + $0xd0] sm:$0xff]  }
  0x43   : > { %1238 = vmatpush3.bf16.msra.mxu1 %v1380_v8  ;;  %1217 = vmatprep.subr.bf16.mxu0 %v1381_v9  ;;  %v1395_v23 = vld [vmem:[%s1681_s8 + $0x10] sm:$0xff]   ;;  %v1397_v25 = vld [vmem:[%s1681_s8 + $0x48] sm:$0xff]   ;;  %v1401_v29 = vld [vmem:[%s1681_s8 + $0x40] sm:$0xff]  }
  0x44   : > { %1239 = vmatprep.subr.bf16.mxu1 %v1382_v10  ;;  %v1396_v24 = vld [vmem:[%s1681_s8 + $0x90] sm:$0xff]   ;;  %v1398_v26 = vld [vmem:[%s1681_s8 + $0xc8] sm:$0xff]   ;;  %v1402_v30 = vld [vmem:[%s1681_s8 + $0xc0] sm:$0xff]  }
  0x45   : > { %v1399_v27 = vld [vmem:[%s1681_s8 + $0x8] sm:$0xff]   ;;  %v1403_v31 = vld [vmem:[%s1681_s8] sm:$0xff]   ;;  %v1409_v39 = vld [vmem:[%s1681_s8 + $0x178] sm:$0xff]  }
  0x46   : > { %1218 = vmatpush3.bf16.msra.mxu0 %v1383_v11  ;;  %v1400_v28 = vld [vmem:[%s1681_s8 + $0x88] sm:$0xff]   ;;  %v1404_v32 = vld [vmem:[%s1681_s8 + $0x80] sm:$0xff]   ;;  %v1410_v40 = vld [vmem:[%s1681_s8 + $0x1f8] sm:$0xff]  }
  0x47   : > { %1240 = vmatpush3.bf16.msra.mxu1 %v1384_v12  ;;  %1219 = vmatprep.subr.bf16.mxu0 %v1385_v13  ;;  %v236_v33 = vld [vmem:[#allocation2] sm:$0xff]  ;;  %v237_v34 = vld [vmem:[#allocation2 + $0x8] sm:$0xff]  ;;  %v1411_v41 = vld [vmem:[%s1681_s8 + $0x138] sm:$0xff]  }
  0x48   : > { %1241 = vmatprep.subr.bf16.mxu1 %v1386_v14  ;;  %v1133_v35 = vcombine.low %v236_v33, %v236_v33  ;;  %v1134_v36 = vcombine.high %v236_v33, %v236_v33  ;;  %v1135_v37 = vcombine.low %v237_v34, %v237_v34  ;;  %v1136_v38 = vcombine.high %v237_v34, %v237_v34  ;;  %v1412_v42 = vld [vmem:[%s1681_s8 + $0x1b8] sm:$0xff]   ;;  %v1413_v43 = vld [vmem:[%s1681_s8 + $0x170] sm:$0xff]   ;;  %v1417_v47 = vld [vmem:[%s1681_s8 + $0x168] sm:$0xff]  }
  0x49   : > { %v1414_v44 = vld [vmem:[%s1681_s8 + $0x1f0] sm:$0xff]   ;;  %v1418_v48 = vld [vmem:[%s1681_s8 + $0x1e8] sm:$0xff]   ;;  %v1421_v51 = vld [vmem:[%s1681_s8 + $0x160] sm:$0xff]  }
  0x4a   : > { %1220 = vmatpush3.bf16.msra.mxu0 %v1387_v15  ;;  %812 = vmatprep.mubr.bf16.mxu0 %v1134_v36  ;;  %v1415_v45 = vld [vmem:[%s1681_s8 + $0x130] sm:$0xff]   ;;  %v1419_v49 = vld [vmem:[%s1681_s8 + $0x128] sm:$0xff]   ;;  %v1422_v52 = vld [vmem:[%s1681_s8 + $0x1e0] sm:$0xff]  }
  0x4b   : > { %1242 = vmatpush3.bf16.msra.mxu1 %v1388_v16  ;;  %1221 = vmatprep.subr.bf16.mxu0 %v1389_v17  ;;  %v1416_v46 = vld [vmem:[%s1681_s8 + $0x1b0] sm:$0xff]   ;;  %v1420_v50 = vld [vmem:[%s1681_s8 + $0x1a8] sm:$0xff]   ;;  %v1423_v53 = vld [vmem:[%s1681_s8 + $0x120] sm:$0xff]  }
  0x4c   : > { %1243 = vmatprep.subr.bf16.mxu1 %v1390_v18  ;;  %852 = vmatprep.mubr.bf16.mxu1 %v1136_v38  ;;  %v1424_v54 = vld [vmem:[%s1681_s8 + $0x1a0] sm:$0xff]   ;;  %v1425_v55 = vld [vmem:[%s1681_s8 + $0x158] sm:$0xff]   ;;  %v1429_v59 = vld [vmem:[%s1681_s8 + $0x150] sm:$0xff]  }
  0x4d   : > { %v1426_v56 = vld [vmem:[%s1681_s8 + $0x1d8] sm:$0xff]   ;;  %v1430_v60 = vld [vmem:[%s1681_s8 + $0x1d0] sm:$0xff]   ;;  %v1433_v63 = vld [vmem:[%s1681_s8 + $0x148] sm:$0xff]  }
  0x4e   : > { %1222 = vmatpush3.bf16.msra.mxu0 %v1391_v19  ;;  %v1427_v57 = vld [vmem:[%s1681_s8 + $0x118] sm:$0xff]   ;;  %v1431_v61 = vld [vmem:[%s1681_s8 + $0x110] sm:$0xff]   ;;  %v1434_v0 = vld [vmem:[%s1681_s8 + $0x1c8] sm:$0xff]  }
  0x4f   : > { %1244 = vmatpush3.bf16.msra.mxu1 %v1392_v20  ;;  %1223 = vmatprep.subr.bf16.mxu0 %v1393_v21  ;;  %v1428_v58 = vld [vmem:[%s1681_s8 + $0x198] sm:$0xff]   ;;  %v1432_v62 = vld [vmem:[%s1681_s8 + $0x190] sm:$0xff]   ;;  %v1435_v1 = vld [vmem:[%s1681_s8 + $0x108] sm:$0xff]  }
  0x50   : > { %1245 = vmatprep.subr.bf16.mxu1 %v1394_v22  ;;  %v1436_v2 = vld [vmem:[%s1681_s8 + $0x188] sm:$0xff]   ;;  %v1437_v3 = vld [vmem:[%s1681_s8 + $0x140] sm:$0xff]   ;;  %v238_v7 = vld [vmem:[#allocation2 + $0x10] sm:$0xff] }
  0x51   : > { %v1438_v4 = vld [vmem:[%s1681_s8 + $0x1c0] sm:$0xff]   ;;  %v1137_v8 = vcombine.low %v238_v7, %v238_v7  ;;  %v1138_v9 = vcombine.high %v238_v7, %v238_v7  ;;  %v239_v10 = vld [vmem:[#allocation2 + $0x18] sm:$0xff] }
  0x52   : > { %1224 = vmatpush3.bf16.msra.mxu0 %v1395_v23  ;;  %v1439_v5 = vld [vmem:[%s1681_s8 + $0x100] sm:$0xff]   ;;  %v1139_v11 = vcombine.low %v239_v10, %v239_v10  ;;  %v1140_v12 = vcombine.high %v239_v10, %v239_v10 }
  0x53   : > { %1246 = vmatpush3.bf16.msra.mxu1 %v1396_v24  ;;  %1225 = vmatprep.subr.bf16.mxu0 %v1397_v25  ;;  %v1440_v6 = vld [vmem:[%s1681_s8 + $0x180] sm:$0xff]  }
  0x54   : > { %1247 = vmatprep.subr.bf16.mxu1 %v1398_v26 }
  0x56   : > { %1226 = vmatpush3.bf16.msra.mxu0 %v1399_v27 }
  0x57   : > { %1248 = vmatpush3.bf16.msra.mxu1 %v1400_v28  ;;  %1227 = vmatprep.subr.bf16.mxu0 %v1401_v29 }
  0x58   : > { %1249 = vmatprep.subr.bf16.mxu1 %v1402_v30 }
  0x5a   : > { %1228 = vmatpush3.bf16.msra.mxu0 %v1403_v31 }
  0x5b   : > { %1250 = vmatpush3.bf16.msra.mxu1 %v1404_v32  ;;  %1257 = vmatprep.subr.bf16.mxu0 %v1409_v39 }
  0x5c   : > { %1279 = vmatprep.subr.bf16.mxu1 %v1410_v40 }
  0x5d   : > { %813 = vmatmul.mubr.bf16.vlgmr.msra.gmra.mxu0 %v1133_v35 }
  0x5e   : > { %853 = vmatmul.mubr.bf16.vlgmr.msra.gmra.mxu1 %v1135_v37  ;;  %1258 = vmatpush3.bf16.msra.mxu0 %v1411_v41 }
  0x5f   : > { %1280 = vmatpush3.bf16.msra.mxu1 %v1412_v42  ;;  %1259 = vmatprep.subr.bf16.mxu0 %v1413_v43 }
  0x60   : > { %1281 = vmatprep.subr.bf16.mxu1 %v1414_v44  ;;  %892 = vmatprep.mubr.bf16.mxu0 %v1138_v9 }
  0x61   : > { %932 = vmatprep.mubr.bf16.mxu1 %v1140_v12 }
  0x62   : > { %1260 = vmatpush3.bf16.msra.mxu0 %v1415_v45 }
  0x63   : > { %1282 = vmatpush3.bf16.msra.mxu1 %v1416_v46  ;;  %1261 = vmatprep.subr.bf16.mxu0 %v1417_v47 }
  0x64   : > { %1283 = vmatprep.subr.bf16.mxu1 %v1418_v48 }
  0x66   : > { %1262 = vmatpush3.bf16.msra.mxu0 %v1419_v49 }
  0x67   : > { %1284 = vmatpush3.bf16.msra.mxu1 %v1420_v50  ;;  %1263 = vmatprep.subr.bf16.mxu0 %v1421_v51 }
  0x68   : > { %1285 = vmatprep.subr.bf16.mxu1 %v1422_v52 }
  0x6a   : > { %1264 = vmatpush3.bf16.msra.mxu0 %v1423_v53 }
  0x6b   : > { %1286 = vmatpush3.bf16.msra.mxu1 %v1424_v54  ;;  %1265 = vmatprep.subr.bf16.mxu0 %v1425_v55 }
  0x6c   : > { %1287 = vmatprep.subr.bf16.mxu1 %v1426_v56 }
  0x6e   : > { %1266 = vmatpush3.bf16.msra.mxu0 %v1427_v57 }
  0x6f   : > { %1288 = vmatpush3.bf16.msra.mxu1 %v1428_v58  ;;  %1267 = vmatprep.subr.bf16.mxu0 %v1429_v59 }
  0x70   : > { %1289 = vmatprep.subr.bf16.mxu1 %v1430_v60 }
  0x72   : > { %1268 = vmatpush3.bf16.msra.mxu0 %v1431_v61 }
  0x73   : > { %1290 = vmatpush3.bf16.msra.mxu1 %v1432_v62  ;;  %1269 = vmatprep.subr.bf16.mxu0 %v1433_v63 }
  0x74   : > { %1291 = vmatprep.subr.bf16.mxu1 %v1434_v0 }
  0x76   : > { %1270 = vmatpush3.bf16.msra.mxu0 %v1435_v1 }
  0x77   : > { %1292 = vmatpush3.bf16.msra.mxu1 %v1436_v2  ;;  %1271 = vmatprep.subr.bf16.mxu0 %v1437_v3 }
  0x78   : > { %1293 = vmatprep.subr.bf16.mxu1 %v1438_v4 }
  0x7a   : > { %1272 = vmatpush3.bf16.msra.mxu0 %v1439_v5 }
  0x7b   : > { %1294 = vmatpush3.bf16.msra.mxu1 %v1440_v6 }
  0x7d   : > { %893 = vmatmul.mubr.bf16.vlgmr.msra.gmra.mxu0 %v1137_v8 }
  0x7e   : > { %933 = vmatmul.mubr.bf16.vlgmr.msra.gmra.mxu1 %v1139_v11 }
 0x11d   : > { %v1229_v13 = vpop.f32.mrf.mxu0 }
 0x11e   : > { %v1251_v14 = vpop.f32.mrf.mxu1 }
 0x11f   : > { %v1230_v15 = vpop.f32.mrf.mxu0 }
 0x120   : > { %v1252_v16 = vpop.f32.mrf.mxu1  ;;  %v1231_v21 = vadd.f32 %v1230_v15, %v1229_v13 }
 0x121   : > { %v1232_v17 = vpop.f32.mrf.mxu0  ;;  %v1253_v22 = vadd.f32 %v1252_v16, %v1251_v14 }
 0x122   : > { %v1254_v18 = vpop.f32.mrf.mxu1 }
 0x123   : > { %v1233_v19 = vpop.f32.mrf.mxu0  ;;  %v855_v27 = vadd.f32 %v1253_v22, %v1231_v21 }
 0x124   : > { %v1255_v20 = vpop.f32.mrf.mxu1 }
 0x13d   : > { %v1273_v23 = vpop.f32.mrf.mxu0 }
 0x13e   : > { %v1295_v24 = vpop.f32.mrf.mxu1 }
 0x13f   : > { %v1274_v25 = vpop.f32.mrf.mxu0 }
 0x140   : > { %v1296_v26 = vpop.f32.mrf.mxu1  ;;  %v1275_v28 = vadd.f32 %v1274_v25, %v1273_v23  ;;  %946 = sbr.rel (%p1206_p3) target bundleno = 756 (0x2f4), region = 44 }
 0x141   : > { %v1276_v29 = vpop.f32.mrf.mxu0  ;;  %v1297_v32 = vadd.f32 %v1296_v26, %v1295_v24 }
 0x142   : > { %v1298_v30 = vpop.f32.mrf.mxu1  ;;  %v895_v31 = vadd.f32 %v1275_v28, %v855_v27 }
 0x143   : > { %v1277_v33 = vpop.f32.mrf.mxu0 }
 0x144   : > { %v1299_v34 = vpop.f32.mrf.mxu1  ;;  %v935_v35 = vadd.f32 %v1297_v32, %v895_v31 }
 0x145   : > { %v948_v36 = vlaneseq  ;;  %v950_v37 = vstv %s1211_s18  ;;  %v1571_v41 = vmov 0   ;;  %v954_v42 = vld [vmem:[%s1692_s9] sm:$0xff] }
 0x146   : > { %1445 = vset.pattern.permute.xlu0 %v1571_v41  ;;  %v969_v52 = vld [vmem:[%s1697_s11] sm:$0xff] }
 0x147   : > { %v949_v38 = vand.u32 127, %v948_v36 }
 0x149   : > { %v951_v39 = vadd.s32 %v950_v37, %v949_v38 }
 0x14b   : > { %vm952_vm1 = vcmp.lt.s32.totalorder %v951_v39, 8 }
 0x14c   : > { %v953_v40 = vsel %vm952_vm1, %v935_v35, -1e+30 }
 0x14d   : > { %955 = vmax.xlane.f32.xlu0 %v953_v40 }
 0x1d6   : > { %v956_v43 = vpop.xlane.xlu0 %955 }
 0x1d7   : > { %v957_v44 = vmax.f32 %v954_v42, %v956_v43 }
 0x1d9   : > { %v958_v45 = vsub.f32 %v954_v42, %v957_v44  ;;  %976 = vst.msk [vmem:[%s1692_s9] sm:$0xff] %vm233_vm0, %v957_v44  ;;  %963 = vperm.xlu0 %1445, %v957_v44  }
 0x1db   : > { %v959_v50 = vmul.f32 1.442695, %v958_v45 }
 0x254   : > { %v964_v46 = vpop.permute.xlu0 %963 }
 0x255   : > { %v966_v47 = vsub.f32 %v953_v40, %v964_v46 }
 0x257   : > { %v967_v48 = vmul.f32 1.442695, %v966_v47 }
 0x259   : > { %1446 = vpow2.f32 %v967_v48 }
 0x25a   : > { %1448 = vpow2.f32 %v959_v50 }
 0x266   : > { %v1447_v49 = vpop.eup %1446 }
 0x267   : > { %971 = vadd.xlane.f32.xlu1 %v1447_v49  ;;  %v1449_v51 = vpop.eup %1448 }
 0x268   : > { %v970_v53 = vmul.f32 %v1449_v51, %v969_v52 }
 0x2f0   : > { %v972_v54 = vpop.xlane.xlu1 %971 }
 0x2f1   : > { %v973_v55 = vadd.f32 %v972_v54, %v970_v53 }
 0x2f3   : > { %975 = vst.msk [vmem:[%s1697_s11] sm:$0xff] %vm233_vm0, %v973_v55 }
 0x2f4 PF: > { %p1208_p4 = scmp.gt.s32.totalorder %s1768_s23, 8 }
 0x2f6   : > { %980 = sbr.rel (%p1208_p4) target bundleno = 1186 (0x4a2), region = 48 }
 0x2fb   : > { %982 = vmax.xlane.f32.xlu0 %v935_v35  ;;  %v1572_v56 = vmov 0   ;;  %v981_v57 = vld [vmem:[%s1692_s9] sm:$0xff] }
 0x2fc   : > { %1450 = vset.pattern.permute.xlu0 %v1572_v56  ;;  %v996_v3 = vld [vmem:[%s1697_s11] sm:$0xff] }
 0x384   : > { %v983_v58 = vpop.xlane.xlu0 %982 }
 0x385   : > { %v984_v59 = vmax.f32 %v981_v57, %v983_v58 }
 0x387   : > { %v985_v60 = vsub.f32 %v981_v57, %v984_v59  ;;  %1003 = vst.msk [vmem:[%s1692_s9] sm:$0xff] %vm233_vm0, %v984_v59  ;;  %990 = vperm.xlu0 %1450, %v984_v59  }
 0x389   : > { %v986_v1 = vmul.f32 1.442695, %v985_v60 }
 0x402   : > { %v991_v61 = vpop.permute.xlu0 %990 }
 0x403   : > { %v993_v62 = vsub.f32 %v935_v35, %v991_v61 }
 0x405   : > { %v994_v63 = vmul.f32 1.442695, %v993_v62 }
 0x407   : > { %1451 = vpow2.f32 %v994_v63 }
 0x408   : > { %1453 = vpow2.f32 %v986_v1 }
 0x414   : > { %v1452_v0 = vpop.eup %1451 }
 0x415   : > { %998 = vadd.xlane.f32.xlu1 %v1452_v0  ;;  %v1454_v2 = vpop.eup %1453 }
 0x416   : > { %v997_v4 = vmul.f32 %v1454_v2, %v996_v3 }
 0x49e   : > { %v999_v5 = vpop.xlane.xlu1 %998 }
 0x49f   : > { %v1000_v6 = vadd.f32 %v999_v5, %v997_v4 }
 0x4a1   : > { %1002 = vst.msk [vmem:[%s1697_s11] sm:$0xff] %vm233_vm0, %v1000_v6 }
 0x4a2 PF: > { %s18_s17 = sadd.s32 1, %s1563_s17   ;;  %s1814_s15 = smov %s1668_s12 }
 0x4a3   : > { %p15_p6 = scmp.ge.s32.totalorder %s18_s17, 4   ;;  %s1815_s12 = smov %s1547_s13 }
 0x4a4   : > { %s1816_s13 = smov %s1551_s14  ;;  %s1817_s14 = smov %s1814_s15 }
 0x4a5   : > { %s1818_s15 = smov %s1559_s16  ;;  %s1819_s16 = smov %s1821_s30 }
 0x4a6   :  { %17 = sbr.rel (!%p15_p6) target bundleno = 5 (0x5), region = 97 }
 0x4ab   :  { %1037 = vsyncpa [#allocation3], 1 }
 0x4ac   :  { %1039 = vsyncpa [#allocation3 + $0x1], 1 }
 0x4ad   :  { %1040 = vsyncpa [#allocation5], 1 }
 0x4ae   :  { %1042 = vsyncpa [#allocation5 + $0x1], 1 }

</bundles_post_ra>
